<compile_context>
chip_gen: v5e
topology: v5e:2x2
jax: 0.10.0
libtpu: 0.0.40
codegen_flags: <defaults>
</compile_context>

<pallas_src>
import functools

import jax
import jax.numpy as jnp
from jax.experimental import pallas as pl
from jax.experimental.pallas import tpu as pltpu


def _round_up(x, m):
    return ((x + m - 1) // m) * m


def _fused_dynamic_conv_kernel(pooled_ref, w1_ref, w2_ref, banks_ref, x_ref,
                               o_ref, wmix_ref, *, kT, kH, kW, Wp, Lo):
    """One grid step = (batch b, output frame t).

    pooled_ref: (B, C)           f32   resident (global-average-pooled x)
    w1_ref:     (C, C//2)        f32   resident
    w2_ref:     (C//2, K)        f32   resident
    banks_ref:  (K, Cout, P*Cin) bf16  resident (taps-major, Cin-minor columns)
    x_ref:      (1, Tp, Cin, Lf) bf16  haloed slab of batch b, resident across t
    o_ref:      (1, Cout, Lo)    f32   per-frame (lane-padded) output tile
    wmix_ref:   (Cout, P*Cin)    bf16  VMEM scratch: per-batch mixed conv weight
    """
    b = pl.program_id(0)
    t = pl.program_id(1)
    Kmix, Cout, PCin = banks_ref.shape

    # ---- once per batch: pooled -> fc1 -> ReLU -> fc2 -> softmax -> mix banks ----
    @pl.when(t == 0)
    def _():
        pool = pooled_ref[pl.ds(b, 1), :]                                     # (1, C) f32
        h = jnp.maximum(
            jnp.dot(pool, w1_ref[...], preferred_element_type=jnp.float32), 0.0)
        logits = jnp.dot(h, w2_ref[...], preferred_element_type=jnp.float32)  # (1, K)
        logits = logits - jnp.max(logits, axis=1, keepdims=True)
        e = jnp.exp(logits)
        a = e / jnp.sum(e, axis=1, keepdims=True)                             # (1, K) f32
        mix = jnp.zeros((Cout, PCin), jnp.float32)
        for k in range(Kmix):                                                 # K is tiny (4)
            mix = mix + a[0:1, k:k + 1] * banks_ref[k].astype(jnp.float32)
        wmix_ref[...] = mix.astype(jnp.bfloat16)

    # ---- assemble the im2col tile for output frame t entirely in VMEM -----------
    # Tap (dt, dh, dw) is a contiguous lane-slice (offset dh*Wp+dw) of the flattened
    # padded frame t+dt; the junk columns where w >= W are discarded in the wrapper.
    frames = [x_ref[0, t + dt] for dt in range(kT)]                           # (Cin, Lf) bf16
    taps = []
    for dt in range(kT):
        for dh in range(kH):
            for dw in range(kW):
                off = dh * Wp + dw
                taps.append(frames[dt][:, off:off + Lo])                      # (Cin, Lo)
    col = jnp.concatenate(taps, axis=0)                                       # (P*Cin, Lo)

    # ---- grouped-conv GEMM on the MXU: (Cout, P*Cin) @ (P*Cin, Lo), f32 acc ------
    o_ref[0] = jnp.dot(wmix_ref[...], col, preferred_element_type=jnp.float32)


def dynamic_conv_forward(x, w1, w2, dyn_w, kernel_size):
    B, C, T, H, W = x.shape
    K, Cout, Cin, kT, kH, kW = dyn_w.shape
    assert C == Cin and tuple(kernel_size) == (kT, kH, kW)
    assert (kT % 2, kH % 2, kW % 2) == (1, 1, 1), "same-size output needs odd kernels"
    pT, pH, pW = kT // 2, kH // 2, kW // 2
    Tp, Hp, Wp = T + 2 * pT, H + 2 * pH, W + 2 * pW
    P = kT * kH * kW
    PCin = P * Cin
    C2 = w1.shape[1]

    LANE = 128
    # Per-frame enlarged output width: row-major (h, w') with w' in [0, Wp), rounded up
    # to full lanes for unmasked stores.  Junk columns are sliced off below.
    Lo = _round_up(H * Wp, LANE)
    # Flattened padded-frame length: must cover the largest tap offset plus Lo.
    Lf = Lo + 2 * pH * Wp + 2 * pW

    # ---- glue: single cheap XLA passes over x / dyn_w (no P-times im2col blowup) ----
    pooled = jnp.mean(x, axis=(2, 3, 4))                                       # (B, C) f32
    # (K, Cout, Cin, kT, kH, kW) -> (K, Cout, P*Cin), taps-major / Cin-minor, bf16 banks
    banks = jnp.transpose(dyn_w, (0, 1, 3, 4, 5, 2)).reshape(K, Cout, PCin)
    banks = banks.astype(jnp.bfloat16)
    # Haloed input slab: zero-pad T/H/W, frame-major layout, flatten (Hp, Wp) per frame.
    x_pad = jnp.pad(x.astype(jnp.bfloat16),
                    ((0, 0), (0, 0), (pT, pT), (pH, pH), (pW, pW)))
    slab = jnp.transpose(x_pad, (0, 2, 1, 3, 4)).reshape(B, Tp, Cin, Hp * Wp)
    slab = jnp.pad(slab, ((0, 0), (0, 0), (0, 0), (0, Lf - Hp * Wp)))          # (B,Tp,Cin,Lf)

    # ---- VMEM budget: double-buffered slab + resident bf16 banks + out tiles --------
    slab_vmem = 2 * Tp * _round_up(Cin, 8) * _round_up(Lf, LANE) * 2
    banks_vmem = 2 * K * _round_up(Cout, 8) * _round_up(PCin, LANE) * 2
    out_vmem = 2 * _round_up(Cout, 8) * Lo * 4
    col_vmem = 4 * _round_up(PCin, 8) * Lo * 2
    vmem_limit = int(min(max(32 << 20,
                             2 * (slab_vmem + banks_vmem + out_vmem + col_vmem)),
                         64 << 20))  # stay within v7x physical VMEM

    # TODO(synk): for very large H*W the resident haloed slab should be streamed in
    # T-chunks via pl.ANY + pltpu.make_async_copy instead of held whole per batch.
    # TODO(synk): when T is large and H*W is tiny, pack several frames per grid step
    # (lane-concat of their column tiles) to amortize the ~0.35 us per-step overhead.
    kernel = functools.partial(_fused_dynamic_conv_kernel,
                               kT=kT, kH=kH, kW=kW, Wp=Wp, Lo=Lo)

    out_big = pl.pallas_call(
        kernel,
        out_shape=jax.ShapeDtypeStruct((B, Cout, T * Lo), jnp.float32),
        grid=(B, T),
        in_specs=[
            pl.BlockSpec((B, C), lambda b, t: (0, 0)),
            pl.BlockSpec((C, C2), lambda b, t: (0, 0)),
            pl.BlockSpec((C2, K), lambda b, t: (0, 0)),
            pl.BlockSpec((K, Cout, PCin), lambda b, t: (0, 0, 0)),
            # per-batch slab: block index independent of t -> resident across frames
            pl.BlockSpec((1, Tp, Cin, Lf), lambda b, t: (b, 0, 0, 0)),
        ],
        out_specs=pl.BlockSpec((1, Cout, Lo), lambda b, t: (b, 0, t)),
        scratch_shapes=[pltpu.VMEM((Cout, PCin), jnp.bfloat16)],
        compiler_params=pltpu.CompilerParams(
            dimension_semantics=("parallel", "arbitrary"),
            vmem_limit_bytes=vmem_limit),
        cost_estimate=pl.CostEstimate(
            flops=2 * B * T * Cout * PCin * Lo + 2 * B * K * Cout * PCin,
            transcendentals=B * K,
            bytes_accessed=(slab.size * 2 + banks.size * 2 + pooled.size * 4
                            + w1.size * 4 + w2.size * 4 + B * Cout * T * Lo * 4)),
    )(pooled, w1, w2, banks, slab)

    # Drop the horizontal-pad / lane-pad junk columns; output is already NC(T)HW ordered.
    out = out_big.reshape(B, Cout, T, Lo)[..., :H * Wp]
    out = out.reshape(B, Cout, T, H, Wp)[..., :W]
    return out


def reference_forward(x, w1, w2, dyn_w, kernel_size):
    """Pure-JAX mirror of the PyTorch module, for validation."""
    B, C, T, H, W = x.shape
    K, Cout, Cin, kT, kH, kW = dyn_w.shape
    a = jnp.mean(x, axis=(2, 3, 4))
    a = jnp.maximum(a @ w1, 0.0)
    a = jax.nn.softmax(a @ w2, axis=1)
    weight = jnp.einsum('bk,koidef->boidef', a, dyn_w,
                        precision=jax.lax.Precision.HIGHEST)
    weight = weight.reshape(B * Cout, Cin, kT, kH, kW)
    xg = x.reshape(1, B * C, T, H, W)
    out = jax.lax.conv_general_dilated(
        xg, weight, window_strides=(1, 1, 1),
        padding=[(kT // 2, kT // 2), (kH // 2, kH // 2), (kW // 2, kW // 2)],
        dimension_numbers=('NCDHW', 'OIDHW', 'NCDHW'),
        feature_group_count=B,
        precision=jax.lax.Precision.HIGHEST)
    return out.reshape(B, Cout, T, H, W)


if __name__ == "__main__":
    key = jax.random.PRNGKey(0)
    B, Cin, Cout, Kmix = 2, 4, 8, 4
    T, H, W = 4, 8, 8
    kernel_size = (3, 3, 3)
    kT, kH, kW = kernel_size

    k_x, k_w1, k_w2, k_dw = jax.random.split(key, 4)
    x = jax.random.normal(k_x, (B, Cin, T, H, W), jnp.float32)
    # fc weights stored already-transposed (y = x @ w), deterministic init
    w1 = jax.random.normal(k_w1, (Cin, Cin // 2), jnp.float32) / jnp.sqrt(float(Cin))
    w2 = jax.random.normal(k_w2, (Cin // 2, Kmix), jnp.float32) / jnp.sqrt(float(Cin // 2))
    # kaiming-uniform-like init for the dynamic weight banks
    bound = float(jnp.sqrt(6.0 / (Cin * kT * kH * kW)))
    dyn_w = jax.random.uniform(k_dw, (Kmix, Cout, Cin, kT, kH, kW), jnp.float32,
                               minval=-bound, maxval=bound)

    out = dynamic_conv_forward(x, w1, w2, dyn_w, kernel_size)
    out = jax.block_until_ready(out)

    ref = reference_forward(x, w1, w2, dyn_w, kernel_size)
    assert out.shape == (B, Cout, T, H, W), out.shape
    max_err = float(jnp.max(jnp.abs(out - ref)))
    assert jnp.allclose(out, ref, rtol=2e-2, atol=2.5e-2), f"max abs err = {max_err}"
    print("KERNEL_OK")
</pallas_src>

<mosaic_0001>
module attributes {stable_mosaic.version = 11 : i64} {
  func.func @_fused_dynamic_conv_kernel(%arg0: i32, %arg1: i32, %arg2: memref<2x4xf32, #tpu.memory_space<vmem>>, %arg3: memref<4x2xf32, #tpu.memory_space<vmem>>, %arg4: memref<2x4xf32, #tpu.memory_space<vmem>>, %arg5: memref<4x8x108xbf16, #tpu.memory_space<vmem>>, %arg6: memref<1x6x4x150xbf16, #tpu.memory_space<vmem>>, %arg7: memref<1x8x128xf32, #tpu.memory_space<vmem>>, %arg8: memref<8x108xbf16, #tpu.memory_space<vmem>>) attributes {dimension_semantics = [#tpu.dimension_semantics<parallel>, #tpu.dimension_semantics<arbitrary>], iteration_bounds = array<i64: 2, 4>, scalar_prefetch = 0 : i64, scratch_operands = 1 : i64, tpu.core_type = #tpu.core_type<tc>, window_params = [{pipeline_mode = #tpu.pipeline_mode<synchronous>, transform_indices = @transform_0, window_bounds = array<i64: 2, 4>}, {pipeline_mode = #tpu.pipeline_mode<synchronous>, transform_indices = @transform_1, window_bounds = array<i64: 4, 2>}, {pipeline_mode = #tpu.pipeline_mode<synchronous>, transform_indices = @transform_2, window_bounds = array<i64: 2, 4>}, {pipeline_mode = #tpu.pipeline_mode<synchronous>, transform_indices = @transform_3, window_bounds = array<i64: 4, 8, 108>}, {transform_indices = @transform_4, window_bounds = array<i64: 1, 6, 4, 150>}, {transform_indices = @transform_5, window_bounds = array<i64: 1, 8, 128>}]} {
    %c0_i32 = arith.constant 0 : i32
    %0 = arith.cmpi eq, %arg1, %c0_i32 : i32
    %1 = arith.extui %0 : i1 to i32
    %c0_i32_0 = arith.constant 0 : i32
    %2 = arith.cmpi ne, %1, %c0_i32_0 : i32
    scf.if %2 {
      %50 = arith.index_cast %arg0 : i32 to index
      %c0_15 = arith.constant 0 : index
      %51 = vector.load %arg2[%50, %c0_15] : memref<2x4xf32, #tpu.memory_space<vmem>>, vector<1x4xf32>
      %c0_16 = arith.constant 0 : index
      %c0_17 = arith.constant 0 : index
      %52 = vector.load %arg3[%c0_16, %c0_17] : memref<4x2xf32, #tpu.memory_space<vmem>>, vector<4x2xf32>
      %cst_18 = arith.constant dense<0.000000e+00> : vector<1x2xf32>
      %53 = tpu.matmul %51, %52, %cst_18 {dimension_numbers = #tpu.dot_dimension_numbers<[1], [0], [0], [1], [0, 0, 1, 1], [], []>} : vector<1x4xf32>, vector<4x2xf32>, vector<1x2xf32> -> vector<1x2xf32>
      %cst_19 = arith.constant 0.000000e+00 : f32
      %54 = vector.broadcast %cst_19 : f32 to vector<1x2xf32>
      %55 = arith.maximumf %53, %54 : vector<1x2xf32>
      %c0_20 = arith.constant 0 : index
      %c0_21 = arith.constant 0 : index
      %56 = vector.load %arg4[%c0_20, %c0_21] : memref<2x4xf32, #tpu.memory_space<vmem>>, vector<2x4xf32>
      %cst_22 = arith.constant dense<0.000000e+00> : vector<1x4xf32>
      %57 = tpu.matmul %55, %56, %cst_22 {dimension_numbers = #tpu.dot_dimension_numbers<[1], [0], [0], [1], [0, 0, 1, 1], [], []>} : vector<1x2xf32>, vector<2x4xf32>, vector<1x4xf32> -> vector<1x4xf32>
      %cst_23 = arith.constant dense<0xFF800000> : vector<1xf32>
      %58 = vector.multi_reduction <maximumf>, %57, %cst_23 [1] : vector<1x4xf32> to vector<1xf32>
      %59 = vector.shape_cast %58 : vector<1xf32> to vector<1x1xf32>
      %60 = vector.broadcast %59 : vector<1x1xf32> to vector<1x4xf32>
      %61 = arith.subf %57, %60 : vector<1x4xf32>
      %62 = math.exp %61 : vector<1x4xf32>
      %cst_24 = arith.constant dense<0.000000e+00> : vector<1xf32>
      %63 = vector.multi_reduction <add>, %62, %cst_24 [1] : vector<1x4xf32> to vector<1xf32>
      %64 = vector.shape_cast %63 : vector<1xf32> to vector<1x1xf32>
      %65 = vector.broadcast %64 : vector<1x1xf32> to vector<1x4xf32>
      %66 = arith.divf %62, %65 : vector<1x4xf32>
      %cst_25 = arith.constant 0.000000e+00 : f32
      %67 = vector.broadcast %cst_25 : f32 to vector<8x108xf32>
      %68 = vector.extract_strided_slice %66 {offsets = [0, 0], sizes = [1, 1], strides = [1, 1]} : vector<1x4xf32> to vector<1x1xf32>
      %c0_26 = arith.constant 0 : index
      %c0_27 = arith.constant 0 : index
      %c0_28 = arith.constant 0 : index
      %69 = vector.load %arg5[%c0_26, %c0_27, %c0_28] : memref<4x8x108xbf16, #tpu.memory_space<vmem>>, vector<1x8x108xbf16>
      %70 = vector.shape_cast %69 : vector<1x8x108xbf16> to vector<8x108xbf16>
      %71 = arith.extf %70 : vector<8x108xbf16> to vector<8x108xf32>
      %72 = vector.broadcast %68 : vector<1x1xf32> to vector<8x108xf32>
      %73 = arith.mulf %72, %71 : vector<8x108xf32>
      %74 = arith.addf %67, %73 : vector<8x108xf32>
      %75 = vector.extract_strided_slice %66 {offsets = [0, 1], sizes = [1, 1], strides = [1, 1]} : vector<1x4xf32> to vector<1x1xf32>
      %c1 = arith.constant 1 : index
      %c0_29 = arith.constant 0 : index
      %c0_30 = arith.constant 0 : index
      %76 = vector.load %arg5[%c1, %c0_29, %c0_30] : memref<4x8x108xbf16, #tpu.memory_space<vmem>>, vector<1x8x108xbf16>
      %77 = vector.shape_cast %76 : vector<1x8x108xbf16> to vector<8x108xbf16>
      %78 = arith.extf %77 : vector<8x108xbf16> to vector<8x108xf32>
      %79 = vector.broadcast %75 : vector<1x1xf32> to vector<8x108xf32>
      %80 = arith.mulf %79, %78 : vector<8x108xf32>
      %81 = arith.addf %74, %80 : vector<8x108xf32>
      %82 = vector.extract_strided_slice %66 {offsets = [0, 2], sizes = [1, 1], strides = [1, 1]} : vector<1x4xf32> to vector<1x1xf32>
      %c2 = arith.constant 2 : index
      %c0_31 = arith.constant 0 : index
      %c0_32 = arith.constant 0 : index
      %83 = vector.load %arg5[%c2, %c0_31, %c0_32] : memref<4x8x108xbf16, #tpu.memory_space<vmem>>, vector<1x8x108xbf16>
      %84 = vector.shape_cast %83 : vector<1x8x108xbf16> to vector<8x108xbf16>
      %85 = arith.extf %84 : vector<8x108xbf16> to vector<8x108xf32>
      %86 = vector.broadcast %82 : vector<1x1xf32> to vector<8x108xf32>
      %87 = arith.mulf %86, %85 : vector<8x108xf32>
      %88 = arith.addf %81, %87 : vector<8x108xf32>
      %89 = vector.extract_strided_slice %66 {offsets = [0, 3], sizes = [1, 1], strides = [1, 1]} : vector<1x4xf32> to vector<1x1xf32>
      %c3 = arith.constant 3 : index
      %c0_33 = arith.constant 0 : index
      %c0_34 = arith.constant 0 : index
      %90 = vector.load %arg5[%c3, %c0_33, %c0_34] : memref<4x8x108xbf16, #tpu.memory_space<vmem>>, vector<1x8x108xbf16>
      %91 = vector.shape_cast %90 : vector<1x8x108xbf16> to vector<8x108xbf16>
      %92 = arith.extf %91 : vector<8x108xbf16> to vector<8x108xf32>
      %93 = vector.broadcast %89 : vector<1x1xf32> to vector<8x108xf32>
      %94 = arith.mulf %93, %92 : vector<8x108xf32>
      %95 = arith.addf %88, %94 : vector<8x108xf32>
      %96 = arith.truncf %95 : vector<8x108xf32> to vector<8x108xbf16>
      %c0_35 = arith.constant 0 : index
      %c0_36 = arith.constant 0 : index
      %97 = vector.load %arg8[%c0_35, %c0_36] : memref<8x108xbf16, #tpu.memory_space<vmem>>, vector<8x108xbf16>
      tpu.vector_store %arg8[%c0_35, %c0_36], %96 {strides = array<i32>} : memref<8x108xbf16, #tpu.memory_space<vmem>>, vector<8x108xbf16>,
    } else {
    }
    %c0_i32_1 = arith.constant 0 : i32
    %3 = arith.addi %arg1, %c0_i32_1 : i32
    %c0 = arith.constant 0 : index
    %4 = arith.index_cast %3 : i32 to index
    %c0_2 = arith.constant 0 : index
    %c0_3 = arith.constant 0 : index
    %5 = vector.load %arg6[%c0, %4, %c0_2, %c0_3] : memref<1x6x4x150xbf16, #tpu.memory_space<vmem>>, vector<1x1x4x150xbf16>
    %6 = vector.shape_cast %5 : vector<1x1x4x150xbf16> to vector<4x150xbf16>
    %c1_i32 = arith.constant 1 : i32
    %7 = arith.addi %arg1, %c1_i32 : i32
    %c0_4 = arith.constant 0 : index
    %8 = arith.index_cast %7 : i32 to index
    %c0_5 = arith.constant 0 : index
    %c0_6 = arith.constant 0 : index
    %9 = vector.load %arg6[%c0_4, %8, %c0_5, %c0_6] : memref<1x6x4x150xbf16, #tpu.memory_space<vmem>>, vector<1x1x4x150xbf16>
    %10 = vector.shape_cast %9 : vector<1x1x4x150xbf16> to vector<4x150xbf16>
    %c2_i32 = arith.constant 2 : i32
    %11 = arith.addi %arg1, %c2_i32 : i32
    %c0_7 = arith.constant 0 : index
    %12 = arith.index_cast %11 : i32 to index
    %c0_8 = arith.constant 0 : index
    %c0_9 = arith.constant 0 : index
    %13 = vector.load %arg6[%c0_7, %12, %c0_8, %c0_9] : memref<1x6x4x150xbf16, #tpu.memory_space<vmem>>, vector<1x1x4x150xbf16>
    %14 = vector.shape_cast %13 : vector<1x1x4x150xbf16> to vector<4x150xbf16>
    %15 = vector.extract_strided_slice %6 {offsets = [0, 0], sizes = [4, 128], strides = [1, 1]} : vector<4x150xbf16> to vector<4x128xbf16>
    %16 = vector.extract_strided_slice %6 {offsets = [0, 1], sizes = [4, 128], strides = [1, 1]} : vector<4x150xbf16> to vector<4x128xbf16>
    %17 = vector.extract_strided_slice %6 {offsets = [0, 2], sizes = [4, 128], strides = [1, 1]} : vector<4x150xbf16> to vector<4x128xbf16>
    %18 = vector.extract_strided_slice %6 {offsets = [0, 10], sizes = [4, 128], strides = [1, 1]} : vector<4x150xbf16> to vector<4x128xbf16>
    %19 = vector.extract_strided_slice %6 {offsets = [0, 11], sizes = [4, 128], strides = [1, 1]} : vector<4x150xbf16> to vector<4x128xbf16>
    %20 = vector.extract_strided_slice %6 {offsets = [0, 12], sizes = [4, 128], strides = [1, 1]} : vector<4x150xbf16> to vector<4x128xbf16>
    %21 = vector.extract_strided_slice %6 {offsets = [0, 20], sizes = [4, 128], strides = [1, 1]} : vector<4x150xbf16> to vector<4x128xbf16>
    %22 = vector.extract_strided_slice %6 {offsets = [0, 21], sizes = [4, 128], strides = [1, 1]} : vector<4x150xbf16> to vector<4x128xbf16>
    %23 = vector.extract_strided_slice %6 {offsets = [0, 22], sizes = [4, 128], strides = [1, 1]} : vector<4x150xbf16> to vector<4x128xbf16>
    %24 = vector.extract_strided_slice %10 {offsets = [0, 0], sizes = [4, 128], strides = [1, 1]} : vector<4x150xbf16> to vector<4x128xbf16>
    %25 = vector.extract_strided_slice %10 {offsets = [0, 1], sizes = [4, 128], strides = [1, 1]} : vector<4x150xbf16> to vector<4x128xbf16>
    %26 = vector.extract_strided_slice %10 {offsets = [0, 2], sizes = [4, 128], strides = [1, 1]} : vector<4x150xbf16> to vector<4x128xbf16>
    %27 = vector.extract_strided_slice %10 {offsets = [0, 10], sizes = [4, 128], strides = [1, 1]} : vector<4x150xbf16> to vector<4x128xbf16>
    %28 = vector.extract_strided_slice %10 {offsets = [0, 11], sizes = [4, 128], strides = [1, 1]} : vector<4x150xbf16> to vector<4x128xbf16>
    %29 = vector.extract_strided_slice %10 {offsets = [0, 12], sizes = [4, 128], strides = [1, 1]} : vector<4x150xbf16> to vector<4x128xbf16>
    %30 = vector.extract_strided_slice %10 {offsets = [0, 20], sizes = [4, 128], strides = [1, 1]} : vector<4x150xbf16> to vector<4x128xbf16>
    %31 = vector.extract_strided_slice %10 {offsets = [0, 21], sizes = [4, 128], strides = [1, 1]} : vector<4x150xbf16> to vector<4x128xbf16>
    %32 = vector.extract_strided_slice %10 {offsets = [0, 22], sizes = [4, 128], strides = [1, 1]} : vector<4x150xbf16> to vector<4x128xbf16>
    %33 = vector.extract_strided_slice %14 {offsets = [0, 0], sizes = [4, 128], strides = [1, 1]} : vector<4x150xbf16> to vector<4x128xbf16>
    %34 = vector.extract_strided_slice %14 {offsets = [0, 1], sizes = [4, 128], strides = [1, 1]} : vector<4x150xbf16> to vector<4x128xbf16>
    %35 = vector.extract_strided_slice %14 {offsets = [0, 2], sizes = [4, 128], strides = [1, 1]} : vector<4x150xbf16> to vector<4x128xbf16>
    %36 = vector.extract_strided_slice %14 {offsets = [0, 10], sizes = [4, 128], strides = [1, 1]} : vector<4x150xbf16> to vector<4x128xbf16>
    %37 = vector.extract_strided_slice %14 {offsets = [0, 11], sizes = [4, 128], strides = [1, 1]} : vector<4x150xbf16> to vector<4x128xbf16>
    %38 = vector.extract_strided_slice %14 {offsets = [0, 12], sizes = [4, 128], strides = [1, 1]} : vector<4x150xbf16> to vector<4x128xbf16>
    %39 = vector.extract_strided_slice %14 {offsets = [0, 20], sizes = [4, 128], strides = [1, 1]} : vector<4x150xbf16> to vector<4x128xbf16>
    %40 = vector.extract_strided_slice %14 {offsets = [0, 21], sizes = [4, 128], strides = [1, 1]} : vector<4x150xbf16> to vector<4x128xbf16>
    %41 = vector.extract_strided_slice %14 {offsets = [0, 22], sizes = [4, 128], strides = [1, 1]} : vector<4x150xbf16> to vector<4x128xbf16>
    %42 = tpu.concatenate %15, %16, %17, %18, %19, %20, %21, %22, %23, %24, %25, %26, %27, %28, %29, %30 in 0 : vector<4x128xbf16>, vector<4x128xbf16>, vector<4x128xbf16>, vector<4x128xbf16>, vector<4x128xbf16>, vector<4x128xbf16>, vector<4x128xbf16>, vector<4x128xbf16>, vector<4x128xbf16>, vector<4x128xbf16>, vector<4x128xbf16>, vector<4x128xbf16>, vector<4x128xbf16>, vector<4x128xbf16>, vector<4x128xbf16>, vector<4x128xbf16> -> vector<64x128xbf16>
    %43 = tpu.concatenate %31, %32, %33, %34, %35, %36, %37, %38, %39, %40, %41 in 0 : vector<4x128xbf16>, vector<4x128xbf16>, vector<4x128xbf16>, vector<4x128xbf16>, vector<4x128xbf16>, vector<4x128xbf16>, vector<4x128xbf16>, vector<4x128xbf16>, vector<4x128xbf16>, vector<4x128xbf16>, vector<4x128xbf16> -> vector<44x128xbf16>
    %44 = tpu.concatenate %42, %43 in 0 : vector<64x128xbf16>, vector<44x128xbf16> -> vector<108x128xbf16>
    %c0_10 = arith.constant 0 : index
    %c0_11 = arith.constant 0 : index
    %45 = vector.load %arg8[%c0_10, %c0_11] : memref<8x108xbf16, #tpu.memory_space<vmem>>, vector<8x108xbf16>
    %cst = arith.constant dense<0.000000e+00> : vector<8x128xf32>
    %46 = tpu.matmul %45, %44, %cst {dimension_numbers = #tpu.dot_dimension_numbers<[1], [0], [0], [1], [0, 0, 1, 1], [], []>} : vector<8x108xbf16>, vector<108x128xbf16>, vector<8x128xf32> -> vector<8x128xf32>
    %c0_12 = arith.constant 0 : index
    %c0_13 = arith.constant 0 : index
    %c0_14 = arith.constant 0 : index
    %47 = vector.load %arg7[%c0_12, %c0_13, %c0_14] : memref<1x8x128xf32, #tpu.memory_space<vmem>>, vector<1x8x128xf32>
    %48 = vector.shape_cast %47 : vector<1x8x128xf32> to vector<8x128xf32>
    %49 = vector.shape_cast %46 : vector<8x128xf32> to vector<1x8x128xf32>
    tpu.vector_store %arg7[%c0_12, %c0_13, %c0_14], %49 {strides = array<i32>} : memref<1x8x128xf32, #tpu.memory_space<vmem>>, vector<1x8x128xf32>,
    return
  }
  func.func @transform_0(%arg0: i32, %arg1: i32) -> (i32, i32) {
    %c0_i32 = arith.constant 0 : i32
    %c0_i32_0 = arith.constant 0 : i32
    %c0_i32_1 = arith.constant 0 : i32
    return %c0_i32, %c0_i32_0 : i32, i32
  }
  func.func @transform_1(%arg0: i32, %arg1: i32) -> (i32, i32) {
    %c0_i32 = arith.constant 0 : i32
    %c0_i32_0 = arith.constant 0 : i32
    %c0_i32_1 = arith.constant 0 : i32
    return %c0_i32, %c0_i32_0 : i32, i32
  }
  func.func @transform_2(%arg0: i32, %arg1: i32) -> (i32, i32) {
    %c0_i32 = arith.constant 0 : i32
    %c0_i32_0 = arith.constant 0 : i32
    %c0_i32_1 = arith.constant 0 : i32
    return %c0_i32, %c0_i32_0 : i32, i32
  }
  func.func @transform_3(%arg0: i32, %arg1: i32) -> (i32, i32, i32) {
    %c0_i32 = arith.constant 0 : i32
    %c0_i32_0 = arith.constant 0 : i32
    %c0_i32_1 = arith.constant 0 : i32
    %c0_i32_2 = arith.constant 0 : i32
    return %c0_i32, %c0_i32_0, %c0_i32_1 : i32, i32, i32
  }
  func.func @transform_4(%arg0: i32, %arg1: i32) -> (i32, i32, i32, i32) {
    %c0_i32 = arith.constant 0 : i32
    %c0_i32_0 = arith.constant 0 : i32
    %c0_i32_1 = arith.constant 0 : i32
    %c0_i32_2 = arith.constant 0 : i32
    return %arg0, %c0_i32, %c0_i32_0, %c0_i32_1 : i32, i32, i32, i32
  }
  func.func @transform_5(%arg0: i32, %arg1: i32) -> (i32, i32, i32) {
    %c0_i32 = arith.constant 0 : i32
    %c0_i32_0 = arith.constant 0 : i32
    return %arg0, %c0_i32, %arg1 : i32, i32, i32
  }
}

</mosaic_0001>

<bundles_post_ra>
// kernel: tpu_custom_call.1
= control target key start
LH: loop header
LB: loop body
LE: loop exit
PB: predicated region body
PF: predicated region fallthrough
CT: control target
= control target key end

     0   :  { %s1745_s0 = inlined_call_operand.vmem [shape: f32[2,4], index: 0, kind: input, shape index: {}]   ;;  %s1746_s1 = inlined_call_operand.vmem [shape: f32[4,2], index: 1, kind: input, shape index: {}]   ;;  %s1747_s2 = inlined_call_operand.vmem [shape: f32[2,4], index: 2, kind: input, shape index: {}]   ;;  %s1748_s3 = inlined_call_operand.hbm [shape: bf16[4,8,108], index: 3, kind: input, shape index: {}]   ;;  %s1749_s4 = inlined_call_operand.hbm [shape: bf16[2,6,4,150], index: 4, kind: input, shape index: {}]   ;;  %s1750_s5 = inlined_call_operand.hbm [shape: f32[2,8,512], index: 5, kind: output, shape index: {}]  }
   0x1   :  { %1762 = sst [smem:[#allocation19_spill]] %s1745_s0 }
   0x2   :  { %1763 = sst [smem:[#allocation20_spill]] %s1747_s2 }
   0x3   :  { %1764 = sst [smem:[#allocation21_spill]] %s1748_s3 }
   0x4   :  { %1765 = sst [smem:[#allocation22_spill]] %s1750_s5 }
   0x5   :  { %10 = vsyncpa [#allocation4], 0 }
   0x6   :  { %11 = vsyncpa [#allocation7], 0 }
   0x7   :  { %13 = vsyncpa [#allocation7 + $0x1], 0 }
   0x8   :  { %14 = vsyncpa [#allocation5], 0 }
   0x9   :  { %16 = vsyncpa [#allocation5 + $0x1], 0  ;;  %s1339_s18 = smov 0   ;;  %s1341_s19 = smov 0  }
   0xa   :  { %s1343_s20 = smov 0   ;;  %s1345_s21 = smov 0  }
   0xb   :  { %s1347_s22 = smov 0   ;;  %s1349_s23 = smov 0  }
   0xc   :  { %s1351_s24 = smov 0   ;;  %s1353_s25 = smov 0  }
   0xd   :  { %s1355_s26 = smov 0   ;;  %s1357_s27 = smov 0  }
   0xe   :  { %s1359_s28 = smov 0  }
   0xf LB: > { %1766 = sst [smem:[#allocation12_spill]] %s1246_s18  ;;  %s925_s29 = sadd.s32 4294967295, %s1286_s28   ;;  %s1286_s28 = sphi %s1359_s28, %s22_s28   ;;  %s1282_s27 = sphi %s1357_s27, %s1792_s27   ;;  %s1278_s26 = sphi %s1355_s26, %s1791_s26   ;;  %s1274_s25 = sphi %s1353_s25, %s1790_s25   ;;  %s1270_s24 = sphi %s1351_s24, %s1789_s24   ;;  %s1266_s23 = sphi %s1349_s23, %s1798_s23   ;;  %s1262_s22 = sphi %s1347_s22, %s1797_s22   ;;  %s1258_s21 = sphi %s1345_s21, %s1796_s21   ;;  %s1254_s20 = sphi %s1343_s20, %s1795_s20   ;;  %s1250_s19 = sphi %s1341_s19, %s1794_s19   ;;  %s1246_s18 = sphi %s1339_s18, %s1793_s18  }
  0x10   : > { %1767 = sst [smem:[#allocation13_spill]] %s1278_s26  ;;  %s926_s30 = sadd.s32 4294967294, %s1286_s28  }
  0x11   : > { %1768 = sst [smem:[#allocation14_spill]] %s1282_s27  ;;  %p138_p0 = scmp.ne.s32.totalorder %s1262_s22, %s1258_s21 }
  0x12   : > { %p1395_p1 = scmp.eq.s32.totalorder %s925_s29, 0  ;;  %p163_p2 = scmp.ne.s32.totalorder %s1254_s20, %s1250_s19 }
  0x13   : > { %p164_p3 = scmp.eq.s32.totalorder %s925_s29, 7  ;;  %p169_p5 = scmp.ne.s32.totalorder %s1250_s19, %s1246_s18 }
  0x14   : > { %p1403_p4 = por %p1395_p1, %p138_p0  ;;  %p170_p7 = scmp.eq.s32.totalorder %s926_s30, 7 }
  0x15   : > { %p1409_p6 = por %p164_p3, %p163_p2  ;;  %p927_p8 = scmp.ge.s32.totalorder %s1286_s28, 1 }
  0x16   : > { %p177_p9 = scmp.lt.s32.totalorder %s1286_s28, 9  ;;  %p1415_p10 = por %p170_p7, %p169_p5 }
  0x17   : > { %s1771_s8 = scalar_select %p1409_p6, 1, 0 }
  0x18   : > { %s1773_s9 = scalar_select %p1415_p10, 1, 0 }
  0x19   : > { %1772 = sst [smem:[#allocation15_spill]] %s1771_s8  ;;  %p1419_p11 = pnand %p927_p8, %p177_p9 }
  0x1a   : > { %1774 = sst [smem:[#allocation16_spill]] %s1773_s9  ;;  %s1288_s14 = smov [#allocation3]  }
  0x1b   : > { %s1776_s3 = sld [smem:[#allocation21_spill]]  ;;  %p971_p12 = pneg %p1419_p11 }
  0x1c   : > { %s199_s15 = sshll.u32 %s1288_s14, 4  ;;  %s1751_s16 = smov 64   ;;  %s200_s15 = int_to_ptr.vmem [resolvable:$true] %s199_s15 }
  0x1d   : > { %p972_p13 = pnand %p971_p12, %p1395_p1  ;;  %s1752_s17 = smov 4  }
  0x1e   : > { %s31_s21 = sadd.s32 1, %s1278_s26  ;;  %s34_s29 = sadd.s32 1, %s1282_s27 }
  0x1f   : > { %p32_p0 = scmp.ge.s32.totalorder %s31_s21, 4  ;;  %s125_s30 = sadd.s32 1, %s1266_s23 }
  0x20   : > { %p132_p2 = scmp.ne.s32.totalorder %s1266_s23, %s1262_s22  ;;  %p133_p3 = scmp.eq.s32.totalorder %s1286_s28, 0 }
  0x21   : > { %s197_s13 = sshll.u32 %s1776_s3, 4  ;;  %s1800_s21 = smov (%p32_p0, %s31_s21), 0  ;;  %s198_s13 = int_to_ptr.hbm [resolvable:$true] %s197_s13 }
  0x22   : > { %974 = dma.hbm_to_vmem [thread:$0]  (!%p972_p13), %s198_s13, 256, %s200_s15, [#allocation4], %s1751_s16, %s1751_s16, %s1752_s17  }
  0x23   : > { %1777 = sst [smem:[#allocation17_spill]] %s1800_s21  ;;  %s1802_s29 = smov (!%p32_p0, %s34_s29), %s1282_s27 }
  0x24   : > { %p1442_p5 = por %p133_p3, %p132_p2  ;;  %s149_s12 = ssub.s32 %s1278_s26, %s1800_s21 }
  0x25   : > { %p36_p7 = scmp.ge.s32.totalorder %s1802_s29, 2  ;;  %s153_s13 = sadd.s32 1, %s1254_s20 }
  0x26   : > { %p984_p8 = scmp.lt.s32.totalorder %s1286_s28, 8  ;;  %s213_s14 = sand.u32 1, %s1266_s23  }
  0x27   : > { %s1804_s29 = smov (%p36_p7, %s1802_s29), 0  ;;  %s952_s15 = smul.u32 24, %s213_s14 }
  0x28   : > { %1779 = sst [smem:[#allocation18_spill]] %s1804_s29  ;;  %s122_s16 = ssub.s32 %s1282_s27, %s1804_s29 }
  0x29   : > { %s953_s17 = smul.u32 24, %s1282_s27  ;;  %p123_p9 = scmp.eq.s32.totalorder %s122_s16, 0 }
  0x2a   : > { %s150_s3 = sor.u32 %s149_s12, %s122_s16  ;;  %s217_s8 = scalar_lea.vmem [#allocation6], %s952_s15 }
  0x2b   : > { %p151_p12 = scmp.eq.s32.totalorder %s150_s3, 0  ;;  %s222_s5 = scalar_lea.hbm %s1749_s4, %s953_s17 }
  0x2c   : > { %s1457_s9 = scalar_select %p123_p9, %s1266_s23, %s125_s30  }
  0x2d   : > { %s1460_s18 = scalar_select %p151_p12, %s1254_s20, %s153_s13  }
  0x2e   : > { %s225_s2 = sshll.u32 %s217_s8, 4  ;;  %s223_s0 = sshll.u32 %s222_s5, 4  ;;  %s226_s2 = int_to_ptr.vmem [resolvable:$true] %s225_s2  ;;  %s224_s0 = int_to_ptr.hbm [resolvable:$true] %s223_s0 }
  0x2f   : > { %p976_p13 = pnand %p984_p8, %p1442_p5  ;;  %s214_s29 = scalar_lea.sflag [#allocation7], %s213_s14 }
  0x30   : > { %s1780_s27 = smov 4   ;;  %s1781_s16 = smov 64  }
  0x31   : > { %978 = dma.hbm_to_vmem [thread:$0]  (!%p976_p13), %s224_s0, 384, %s226_s2, %s214_s29, %s1781_s16, %s1781_s16, %s1780_s27  }
  0x32   : > { %237 = sbr.rel (%p1419_p11) target bundleno = 1385 (0x569), region = 40 }
  0x37   : > { %1233 = dma.done.wait (%p1395_p1), [#allocation4], 256  }
  0x38   : > { %1235 = vsyncadd (%p1395_p1), [#allocation4], 4294967040  ;;  %s244_s3 = sand.u32 1, %s1262_s22  }
  0x39   : > { %s1479_s5 = smul.u32 24, %s244_s3  ;;  %s245_s26 = scalar_lea.sflag [#allocation7], %s244_s3 }
  0x3b   : > { %s248_s8 = scalar_lea.vmem [#allocation6], %s1479_s5 }
  0x3c   : > { %1237 = dma.done.wait (%p1403_p4), %s245_s26, 384  }
  0x3d   : > { %1239 = vsyncadd (%p1403_p4), %s245_s26, 4294966912  ;;  %s273_s0 = sand.u32 1, %s1250_s19   ;;  %p934_p1 = scmp.ne.s32.totalorder %s1270_s24, 0 }
  0x3e   : > { %s1489_s2 = sshll.u32 %s273_s0, 3  ;;  %s1782_s21 = sld [smem:[#allocation19_spill]] (!%p934_p1) }
  0x3f   : > { %s275_s27 = scalar_lea.vmem [#allocation8], %s1489_s2  ;;  %280 = sbr.rel (%p934_p1) target bundleno = 771 (0x303), region = 52 }
  0x40   : > { %s1783_s12 = sld [smem:[#allocation20_spill]] (!%p934_p1)  ;;  %s1291_s13 = smov (!%p934_p1), 125  }
  0x41   : > { %s1292_s14 = smov (!%p934_p1), 127   ;;  %s1293_s15 = smov (!%p934_p1), 126  }
  0x44   : > { %v283_v0 = vld [vmem:[%s1746_s1] sm:$0xf]  ;;  %vm288_vm0 = vcmask 1043456   ;;  %s281_s29 = scalar_lea.vmem %s1782_s21, %s1274_s25  ;;  %vm284_vm1 = vcmask 31744   ;;  %vm318_vm2 = vcmask 1041408   ;;  %vm314_vm3 = vcmask 15360  }
  0x45   : > { %935 = vmatpush.msk.msra.mxu0 %vm288_vm0, %v283_v0  ;;  %v282_v1 = vld [vmem:[%s281_s29] sm:$0x1]  ;;  %vm342_vm4 = vcmask 24576   ;;  %v376_v27 = vld [vmem:[#allocation3 + $0x4] sm:$0xf]  ;;  %vm406_vm9 = vcmask 879616  }
  0x46   : > { %936 = vmatmul.msk.f32.vlgmr.msra.gmra.mxu0 %vm284_vm1, %v282_v1  ;;  %v313_v2 = vld [vmem:[%s1783_s12] sm:$0x3]  ;;  %v367_v28 = vld [vmem:[#allocation3] sm:$0xf]  ;;  %v377_v29 = vunpack.c.l.bf16 %v376_v27  ;;  %v386_v31 = vld [vmem:[#allocation3 + $0x8] sm:$0xf] }
  0x47   : > { %937 = vmatpush.msk.msra.mxu1 %vm318_vm2, %v313_v2  ;;  %v368_v32 = vunpack.c.l.bf16 %v367_v28  ;;  %v396_v34 = vld [vmem:[#allocation3 + $0xc] sm:$0xf]  ;;  %v387_v36 = vunpack.c.l.bf16 %v386_v31 }
  0x48   : > { %v397_v38 = vunpack.c.l.bf16 %v396_v34 }
  0xc3   : > { %v309_v3 = vpop.f32.mrf.mxu0 }
  0xc4   : > { %v312_v4 = vmax.f32 %v309_v3, 0.0 }
  0xc6   : > { %938 = vmatmul.msk.f32.vlgmr.msra.gmra.mxu1 %vm314_vm3, %v312_v4 }
 0x143   : > { %v339_v5 = vpop.f32.mrf.mxu1 }
 0x144   : > { %v343_v6 = vsel %vm342_vm4, %v339_v5, -inf }
 0x145   : > { %344 = vmax.xlane.f32.xlu0 %v343_v6 }
 0x1b8   : > { %v345_v7 = vpop.xlane.xlu0 %344 }
 0x1b9   : > { %v346_v8 = vsub.f32 %v339_v5, %v345_v7 }
 0x1bb   : > { %v347_v9 = vmul.f32 1.442695, %v346_v8 }
 0x1bd   : > { %1096 = vpow2.f32 %v347_v9 }
 0x1c3   : > { %v1097_v10 = vpop.eup %1096 }
 0x1c4   : > { %v349_v11 = vsel %vm342_vm4, %v1097_v10, 0.0 }
 0x1c5   : > { %350 = vadd.xlane.f32.xlu0 %v349_v11 }
 0x238   : > { %v351_v12 = vpop.xlane.xlu0 %350 }
 0x239   : > { %1098 = vrcp.f32 %v351_v12  ;;  %v363_v16 = vand.u32 2147483648, %v351_v12  ;;  %v361_v18 = vand.u32 2147483647, %v351_v12  ;;  %vm357_vm6 = vweird.f32 %v351_v12 }
 0x23b   : > { %v364_v20 = vor.u32 1.1754944e-38, %v363_v16  ;;  %vm362_vm8 = vcmp.eq.f32.partialorder %v361_v18, 8.507059e+37 }
 0x23f   : > { %v1099_v13 = vpop.eup %1098 }
 0x240   : > { %v353_v14 = vmul.f32 %v1099_v13, %v351_v12  ;;  %vm358_vm5 = vweird.f32 %v1099_v13 }
 0x241   : > { %vm359_vm7 = vmor %vm357_vm6, %vm358_vm5 }
 0x242   : > { %v354_v15 = vsub.f32 1.0, %v353_v14 }
 0x244   : > { %v355_v17 = vmul.f32 %v1099_v13, %v354_v15 }
 0x246   : > { %v356_v19 = vadd.f32 %v1099_v13, %v355_v17 }
 0x248   : > { %v360_v21 = vsel %vm359_vm7, %v1099_v13, %v356_v19 }
 0x249   : > { %v365_v22 = vsel %vm362_vm8, %v364_v20, %v360_v21 }
 0x24a   : > { %v366_v23 = vmul.f32 %v1097_v10, %v365_v22 }
 0x24c   : > { %398 = vrot.lane.b32.xlu2 %v366_v23, %s1291_s13  ;;  %378 = vrot.lane.b32.xlu1 %v366_v23, %s1292_s14  ;;  %955 = vpush %v366_v23 }
 0x254   : > { %388 = vrot.lane.b32.xlu1 %v366_v23, %s1293_s15 }
 0x27d   : > { %s956_s16 = spop %955 }
 0x27e   : > { %v371_v33 = vstv %s956_s16 }
 0x27f   : > { %v373_v37 = vmul.f32 %v371_v33, %v368_v32 }
 0x2a6   : > { %v399_v26 = vpop.permute.xlu2 %398 }
 0x2be   : > { %v379_v24 = vpop.permute.xlu1 %378 }
 0x2bf   : > { %957 = vpush %v379_v24 }
 0x2c6   : > { %v389_v25 = vpop.permute.xlu1 %388 }
 0x2c7   : > { %959 = vpush %v389_v25 }
 0x2c8   : > { %961 = vpush %v399_v26 }
 0x2f0   : > { %s958_s3 = spop %957 }
 0x2f1   : > { %v381_v30 = vstv %s958_s3 }
 0x2f2   : > { %v383_v35 = vmul.f32 %v381_v30, %v377_v29 }
 0x2f4   : > { %v384_v40 = vadd.f32 %v383_v35, %v373_v37 }
 0x2f8   : > { %s960_s26 = spop %959 }
 0x2f9   : > { %v391_v39 = vstv %s960_s26  ;;  %s962_s6 = spop %961 }
 0x2fa   : > { %v393_v41 = vmul.f32 %v391_v39, %v387_v36  ;;  %v401_v42 = vstv %s962_s6 }
 0x2fb   : > { %v403_v44 = vmul.f32 %v401_v42, %v397_v38 }
 0x2fc   : > { %v394_v43 = vadd.f32 %v393_v41, %v384_v40 }
 0x2fe   : > { %v404_v45 = vadd.f32 %v403_v44, %v394_v43 }
 0x300   : > { %v405_v46 = vpack.c.bf16 %v404_v45, %v404_v45 }
 0x302   : > { %407 = vst.msk [vmem:[#allocation2] sm:$0xf] %vm406_vm9, %v405_v46 }
 0x303 PF: > { %s951_s10 = sshll.u32 %s1270_s24, 2  ;;  %s1294_s5 = smov 118   ;;  %vm457_vm10 = vcmask 965632   ;;  %vm468_vm11 = vcmask 957440   ;;  %vm586_vm12 = vcmask 1041408   ;;  %vm480_vm13 = vcmask 949248  }
 0x304   : > { %s1506_s17 = scalar_lea.vmem %s248_s8, %s951_s10 [#allocation6]  ;;  %s1295_s8 = smov 117   ;;  %vm589_vm14 = vcmask 1043456   ;;  %vm433_vm15 = vcmask 1039360   ;;  %vm650_vm0 = vcmask 162816   ;;  %vm592_vm1 = vcmask 1045504  }
 0x305   : > { %v1509_v47 = vld [vmem:[%s1506_s17] sm:$0xf]  ;;  %v942_v62 = vld [vmem:[%s1506_s17 + $0x4] sm:$0xf]  ;;  %s1296_s7 = smov 116   ;;  %s1297_s21 = smov 108  }
 0x306   : > { %424 = vst [vmem:[#allocation1 + $0x1] ss:$4 sm:$0xff] %v1509_v47  ;;  %v944_v16 = vld [vmem:[%s1506_s17 + $0x8] sm:$0xf]  ;;  %s1298_s29 = smov 127   ;;  %s1299_s30 = smov 21  }
 0x307   : > { %s1300_s11 = smov 20   ;;  %s1301_s12 = smov 19   ;;  %vm661_vm2 = vcmask 154624   ;;  %vm673_vm3 = vcmask 89088   ;;  %vm685_vm4 = vcmask 80896   ;;  %vm697_vm5 = vcmask 72704  }
 0x308   : > { %s1302_s13 = smov 11   ;;  %s1303_s14 = smov 10   ;;  %vm708_vm6 = vcmask 7168   ;;  %vm504_vm7 = vcmask 875520   ;;  %vm515_vm8 = vcmask 867328   ;;  %vm492_vm9 = vcmask 883712  }
 0x309   : > { %s1304_s15 = smov 9   ;;  %s1305_s16 = smov 1  }
 0x30a   : > { %s1306_s3 = smov 106   ;;  %s1307_s26 = smov 126  }
 0x30b   : > { %s1308_s6 = smov 107   ;;  %s947_s17 = sshll.u32 %s1274_s25, 2 }
 0x30d   : > { %v1512_v48 = vld.sshfl [vmem:[#allocation1] sm:$0xff pattern:$0x73625140]  ;;  %v1514_v49 = vld.sshfl [vmem:[#allocation1 + $0x8] sm:$0xff pattern:$0x73625140] }
 0x30e   : > { %436 = vst [vmem:[#allocation1 + $0x2] ss:$4 sm:$0xff] %v1509_v47 }
 0x315   : > { %v1517_v50 = vld.sshfl [vmem:[#allocation1] sm:$0xff pattern:$0x73625140]  ;;  %v1519_v51 = vld.sshfl [vmem:[#allocation1 + $0x8] sm:$0xff pattern:$0x73625140] }
 0x316   : > { %448 = vst [vmem:[#allocation1 + $0x3] ss:$4 sm:$0xff] %v1509_v47 }
 0x31d   : > { %v1522_v52 = vld.sshfl [vmem:[#allocation1] sm:$0xff pattern:$0x73625140]  ;;  %v1524_v53 = vld.sshfl [vmem:[#allocation1 + $0x8] sm:$0xff pattern:$0x73625140] }
 0x31e   : > { %459 = vst [vmem:[#allocation1] ss:$4 sm:$0xff] %v1509_v47 }
 0x325   : > { %v1527_v54 = vld.sshfl [vmem:[#allocation1] sm:$0xff pattern:$0x73625140]  ;;  %v1529_v55 = vld.sshfl [vmem:[#allocation1 + $0x8] sm:$0xff pattern:$0x73625140] }
 0x326   : > { %471 = vst [vmem:[#allocation1 + $0x1] ss:$4 sm:$0xff] %v1509_v47 }
 0x32d   : > { %v1532_v56 = vld.sshfl [vmem:[#allocation1] sm:$0xff pattern:$0x73625140]  ;;  %v1534_v57 = vld.sshfl [vmem:[#allocation1 + $0x8] sm:$0xff pattern:$0x73625140] }
 0x32e   : > { %483 = vst [vmem:[#allocation1 + $0x2] ss:$4 sm:$0xff] %v1509_v47 }
 0x335   : > { %v1537_v58 = vld.sshfl [vmem:[#allocation1] sm:$0xff pattern:$0x73625140]  ;;  %v1539_v59 = vld.sshfl [vmem:[#allocation1 + $0x8] sm:$0xff pattern:$0x73625140] }
 0x336   : > { %495 = vst [vmem:[#allocation1 + $0x3] ss:$4 sm:$0xff] %v1509_v47 }
 0x33d   : > { %v1542_v60 = vld.sshfl [vmem:[#allocation1] sm:$0xff pattern:$0x73625140]  ;;  %v1544_v61 = vld.sshfl [vmem:[#allocation1 + $0x8] sm:$0xff pattern:$0x73625140] }
 0x33e   : > { %506 = vst [vmem:[#allocation1] ss:$4 sm:$0xff] %v1509_v47 }
 0x345   : > { %v1548_v63 = vld.sshfl [vmem:[#allocation1] sm:$0xff pattern:$0x73625140]  ;;  %v1550_v0 = vld.sshfl [vmem:[#allocation1 + $0x8] sm:$0xff pattern:$0x73625140] }
 0x346   : > { %519 = vst [vmem:[#allocation1 + $0x1] ss:$4 sm:$0xff] %v942_v62 }
 0x34d   : > { %v1552_v1 = vld.sshfl [vmem:[#allocation1] sm:$0xff pattern:$0x73625140] }
 0x34e   : > { %522 = vst [vmem:[#allocation1 + $0x2] ss:$4 sm:$0xff] %v942_v62 }
 0x355   : > { %v1554_v2 = vld.sshfl [vmem:[#allocation1] sm:$0xff pattern:$0x73625140]  ;;  %v1556_v3 = vld.sshfl [vmem:[#allocation1 + $0x8] sm:$0xff pattern:$0x73625140] }
 0x356   : > { %533 = vst [vmem:[#allocation1 + $0x3] ss:$4 sm:$0xff] %v942_v62 }
 0x35d   : > { %v1558_v4 = vld.sshfl [vmem:[#allocation1] sm:$0xff pattern:$0x73625140]  ;;  %v1560_v5 = vld.sshfl [vmem:[#allocation1 + $0x8] sm:$0xff pattern:$0x73625140] }
 0x35e   : > { %543 = vst [vmem:[#allocation1] ss:$4 sm:$0xff] %v942_v62 }
 0x365   : > { %v546_v6 = vld.sshfl [vmem:[#allocation1 + $0x8] sm:$0xff pattern:$0x73625140]  ;;  %v544_v7 = vld.sshfl [vmem:[#allocation1] sm:$0xff pattern:$0x73625140] }
 0x366   : > { %550 = vrot.lane.b32.xlu0 %v546_v6, %s1294_s5  ;;  %554 = vst [vmem:[#allocation1 + $0x1] ss:$4 sm:$0xff] %v942_v62  ;;  %548 = vrot.lane.b32.xlu2 %v544_v7, %s1294_s5 }
 0x36d   : > { %v555_v8 = vld.sshfl [vmem:[#allocation1] sm:$0xff pattern:$0x73625140]  ;;  %v557_v9 = vld.sshfl [vmem:[#allocation1 + $0x8] sm:$0xff pattern:$0x73625140] }
 0x36e   : > { %559 = vrot.lane.b32.xlu1 %v555_v8, %s1295_s8  ;;  %565 = vst [vmem:[#allocation1 + $0x2] ss:$4 sm:$0xff] %v942_v62  ;;  %561 = vrot.lane.b32.xlu2 %v557_v9, %s1295_s8 }
 0x375   : > { %v568_v10 = vld.sshfl [vmem:[#allocation1 + $0x8] sm:$0xff pattern:$0x73625140]  ;;  %v566_v11 = vld.sshfl [vmem:[#allocation1] sm:$0xff pattern:$0x73625140] }
 0x376   : > { %572 = vrot.lane.b32.xlu1 %v568_v10, %s1296_s7  ;;  %570 = vrot.lane.b32.xlu0 %v566_v11, %s1296_s7  ;;  %576 = vst [vmem:[#allocation1 + $0x3] ss:$4 sm:$0xff] %v942_v62 }
 0x37d   : > { %v577_v12 = vld.sshfl [vmem:[#allocation1] sm:$0xff pattern:$0x73625140]  ;;  %v579_v13 = vld.sshfl [vmem:[#allocation1 + $0x8] sm:$0xff pattern:$0x73625140] }
 0x37e   : > { %619 = vst [vmem:[#allocation1] ss:$4 sm:$0xff] %v942_v62  ;;  %581 = vrot.lane.b32.xlu2 %v577_v12, %s1297_s21 }
 0x385   : > { %v1569_v14 = vld.sshfl [vmem:[#allocation1] sm:$0xff pattern:$0x73625140]  ;;  %v1571_v15 = vld.sshfl [vmem:[#allocation1 + $0x8] sm:$0xff pattern:$0x73625140] }
 0x386   : > { %623 = vst [vmem:[#allocation1 + $0x1] ss:$4 sm:$0xff] %v942_v62 }
 0x38d   : > { %v626_v17 = vld.sshfl [vmem:[#allocation1 + $0x8] sm:$0xff pattern:$0x73625140]  ;;  %v624_v18 = vld.sshfl [vmem:[#allocation1] sm:$0xff pattern:$0x73625140] }
 0x38e   : > { %630 = vrot.lane.b32.xlu1 %v626_v17, %s1298_s29  ;;  %628 = vrot.lane.b32.xlu0 %v624_v18, %s1298_s29  ;;  %635 = vst [vmem:[#allocation1 + $0x2] ss:$4 sm:$0xff] %v944_v16 }
 0x395   : > { %v636_v19 = vld.sshfl [vmem:[#allocation1] sm:$0xff pattern:$0x73625140] }
 0x396   : > { %641 = vst [vmem:[#allocation1 + $0x3] ss:$4 sm:$0xff] %v944_v16  ;;  %638 = vrot.lane.b32.xlu2 %v636_v19, %s1299_s30 }
 0x39d   : > { %v644_v20 = vld.sshfl [vmem:[#allocation1 + $0x8] sm:$0xff pattern:$0x73625140]  ;;  %v642_v21 = vld.sshfl [vmem:[#allocation1] sm:$0xff pattern:$0x73625140] }
 0x39e   : > { %648 = vrot.lane.b32.xlu1 %v644_v20, %s1300_s11  ;;  %646 = vrot.lane.b32.xlu0 %v642_v21, %s1300_s11  ;;  %652 = vst [vmem:[#allocation1] ss:$4 sm:$0xff] %v944_v16  ;;  %s818_s11 = sshll.u32 %s275_s27, 4  ;;  %s819_s11 = int_to_ptr.vmem [resolvable:$true] %s818_s11 }
 0x3a5   : > { %v653_v22 = vld.sshfl [vmem:[#allocation1] sm:$0xff pattern:$0x73625140]  ;;  %v655_v23 = vld.sshfl [vmem:[#allocation1 + $0x8] sm:$0xff pattern:$0x73625140] }
 0x3a6   : > { %664 = vst [vmem:[#allocation1 + $0x1] ss:$4 sm:$0xff] %v944_v16  ;;  %657 = vrot.lane.b32.xlu2 %v653_v22, %s1301_s12 }
 0x3ad   : > { %v667_v24 = vld.sshfl [vmem:[#allocation1 + $0x8] sm:$0xff pattern:$0x73625140]  ;;  %v665_v25 = vld.sshfl [vmem:[#allocation1] sm:$0xff pattern:$0x73625140] }
 0x3ae   : > { %671 = vrot.lane.b32.xlu1 %v667_v24, %s1302_s13  ;;  %669 = vrot.lane.b32.xlu0 %v665_v25, %s1302_s13  ;;  %676 = vst [vmem:[#allocation1 + $0x2] ss:$4 sm:$0xff] %v944_v16  ;;  %s804_s13 = scalar_lea.sflag [#allocation5], %s273_s0 }
 0x3af   : > { %659 = vrot.lane.b32.xlu2 %v655_v23, %s1301_s12 }
 0x3b5   : > { %v679_v26 = vld.sshfl [vmem:[#allocation1 + $0x8] sm:$0xff pattern:$0x73625140]  ;;  %v677_v27 = vld.sshfl [vmem:[#allocation1] sm:$0xff pattern:$0x73625140] }
 0x3b6   : > { %683 = vrot.lane.b32.xlu0 %v679_v26, %s1303_s14  ;;  %688 = vst [vmem:[#allocation1 + $0x3] ss:$4 sm:$0xff] %v944_v16 }
 0x3b7   : > { %681 = vrot.lane.b32.xlu2 %v677_v27, %s1303_s14 }
 0x3bd   : > { %v689_v28 = vld.sshfl [vmem:[#allocation1] sm:$0xff pattern:$0x73625140]  ;;  %v691_v29 = vld.sshfl [vmem:[#allocation1 + $0x8] sm:$0xff pattern:$0x73625140] }
 0x3be   : > { %693 = vrot.lane.b32.xlu1 %v689_v28, %s1304_s15  ;;  %699 = vst [vmem:[#allocation1] ss:$4 sm:$0xff] %v944_v16 }
 0x3bf   : > { %695 = vrot.lane.b32.xlu2 %v691_v29, %s1304_s15 }
 0x3c0   : > { %v549_v35 = vpop.permute.xlu2 %548 }
 0x3c5   : > { %v700_v30 = vld.sshfl [vmem:[#allocation1] sm:$0xff pattern:$0x73625140]  ;;  %v702_v31 = vld.sshfl [vmem:[#allocation1 + $0x8] sm:$0xff pattern:$0x73625140] }
 0x3c6   : > { %704 = vrot.lane.b32.xlu0 %v700_v30, %s1305_s16  ;;  %711 = vst [vmem:[#allocation1 + $0x1] ss:$4 sm:$0xff] %v944_v16 }
 0x3c7   : > { %513 = vrot.lane.b32.xlu2 %v1550_v0, %s1306_s3 }
 0x3c8   : > { %v562_v39 = vpop.permute.xlu2 %561 }
 0x3cd   : > { %v1577_v32 = vld.sshfl [vmem:[#allocation1] sm:$0xff pattern:$0x73625140]  ;;  %v1579_v33 = vld.sshfl [vmem:[#allocation1 + $0x8] sm:$0xff pattern:$0x73625140] }
 0x3ce   : > { %706 = vrot.lane.b32.xlu0 %v702_v31, %s1305_s16  ;;  %715 = vst [vmem:[#allocation1 + $0x2] ss:$4 sm:$0xff] %v944_v16 }
 0x3cf   : > { %538 = vrot.lane.b32.xlu2 %v1558_v4, %s1307_s26 }
 0x3d5   : > { %v716_v34 = vld.sshfl [vmem:[#allocation1] sm:$0xff pattern:$0x73625140]  ;;  %v718_v38 = vld.sshfl [vmem:[#allocation1 + $0x8] sm:$0xff pattern:$0x73625140] }
 0x3d6   : > { %583 = vrot.lane.b32.xlu0 %v579_v13, %s1297_s21  ;;  %720 = vrot.lane.b32.xlu1 %v716_v34, %s1298_s29 }
 0x3d7   : > { %466 = vrot.lane.b32.xlu2 %v1529_v55, %s1295_s8 }
 0x3d8   : > { %v551_v36 = vpop.permute.xlu0 %550  ;;  %v1608_v55 = vpop.permute.xlu2 %581 }
 0x3d9   : > { %v552_v37 = vsel %vm457_vm10, %v549_v35, %v551_v36 }
 0x3de   : > { %722 = vrot.lane.b32.xlu1 %v718_v38, %s1298_s29  ;;  %527 = vrot.lane.b32.xlu0 %v1554_v2, %s1298_s29 }
 0x3df   : > { %488 = vrot.lane.b32.xlu2 %v1537_v58, %s1297_s21 }
 0x3e0   : > { %v560_v40 = vpop.permute.xlu1 %559 }
 0x3e1   : > { %v563_v41 = vsel %vm468_vm11, %v560_v40, %v562_v39 }
 0x3e2   : > { %v613_v42 = vsel %vm586_vm12, %v552_v37, %v563_v41 }
 0x3e6   : > { %511 = vrot.lane.b32.xlu1 %v1548_v63, %s1306_s3  ;;  %540 = vrot.lane.b32.xlu0 %v1560_v5, %s1307_s26 }
 0x3e8   : > { %v573_v43 = vpop.permute.xlu1 %572  ;;  %v571_v44 = vpop.permute.xlu0 %570 }
 0x3e9   : > { %v574_v45 = vsel %vm480_vm13, %v571_v44, %v573_v43 }
 0x3ea   : > { %v1606_v46 = vsel %vm589_vm14, %v613_v42, %v574_v45 }
 0x3ee   : > { %529 = vrot.lane.b32.xlu1 %v1556_v3, %s1298_s29  ;;  %476 = vrot.lane.b32.xlu0 %v1532_v56, %s1296_s7 }
 0x3f0   : > { %v639_v58 = vpop.permute.xlu2 %638 }
 0x3f6   : > { %464 = vrot.lane.b32.xlu1 %v1527_v54, %s1295_s8 }
 0x3fe   : > { %478 = vrot.lane.b32.xlu1 %v1534_v57, %s1296_s7 }
 0x400   : > { %v631_v62 = vpop.permute.xlu1 %630  ;;  %v629_v63 = vpop.permute.xlu0 %628 }
 0x401   : > { %v632_v0 = vsel %vm433_vm15, %v629_v63, %v631_v62  ;;  %v728_v54 = vsel %vm586_vm12, %v1571_v15, %v631_v62  ;;  %v658_v3 = vpop.permute.xlu2 %657 }
 0x402   : > { %v726_v56 = vsel %vm586_vm12, %v1569_v14, %v632_v0  ;;  %v731_v4 = vsel %vm589_vm14, %v728_v54, %v639_v58 }
 0x403   : > { %v730_v2 = vsel %vm589_vm14, %v726_v56, %v639_v58 }
 0x409   : > { %v660_v9 = vpop.permute.xlu2 %659 }
 0x40a   : > { %v662_v13 = vsel %vm661_vm2, %v658_v3, %v660_v9 }
 0x410   : > { %v649_v57 = vpop.permute.xlu1 %648  ;;  %v647_v5 = vpop.permute.xlu0 %646 }
 0x411   : > { %v651_v6 = vsel %vm650_vm0, %v647_v5, %v649_v57  ;;  %v733_v7 = vsel %vm592_vm1, %v730_v2, %v647_v5  ;;  %v682_v11 = vpop.permute.xlu2 %681  ;;  %vm445_vm0 = vcmask 1031168  }
 0x412   : > { %v735_v8 = vsel %vm592_vm1, %v731_v4, %v651_v6  ;;  %764 = vrot.lane.b32.xlu0 %v733_v7, %s1308_s6 }
 0x413   : > { %766 = vrot.lane.b32.xlu1 %v735_v8, %s1308_s6 }
 0x419   : > { %v696_v20 = vpop.permute.xlu2 %695 }
 0x420   : > { %v670_v10 = vpop.permute.xlu0 %669  ;;  %v672_v12 = vpop.permute.xlu1 %671 }
 0x421   : > { %v674_v14 = vsel %vm673_vm3, %v670_v10, %v672_v12  ;;  %v738_v15 = vsel %vm586_vm12, %v658_v3, %v670_v10 }
 0x422   : > { %v741_v17 = vsel %vm586_vm12, %v662_v13, %v674_v14  ;;  %v743_v19 = vsel %vm589_vm14, %v738_v15, %v682_v11 }
 0x428   : > { %v684_v16 = vpop.permute.xlu0 %683 }
 0x429   : > { %v686_v18 = vsel %vm685_vm4, %v682_v11, %v684_v16 }
 0x42a   : > { %v745_v21 = vsel %vm589_vm14, %v741_v17, %v686_v18 }
 0x430   : > { %v694_v22 = vpop.permute.xlu1 %693 }
 0x431   : > { %v747_v23 = vsel %vm592_vm1, %v743_v19, %v694_v22  ;;  %v698_v24 = vsel %vm697_vm5, %v694_v22, %v696_v20 }
 0x432   : > { %768 = vrot.lane.b32.xlu1 %v747_v23, %s1308_s6  ;;  %v749_v25 = vsel %vm592_vm1, %v745_v21, %v698_v24 }
 0x433   : > { %770 = vrot.lane.b32.xlu2 %v749_v25, %s1308_s6  ;;  %v781_v25 = vld [vmem:[#allocation2] sm:$0xf] }
 0x438   : > { %v705_v26 = vpop.permute.xlu0 %704 }
 0x439   : > { %v751_v34 = vsel %vm586_vm12, %v705_v26, %v1577_v32  ;;  %v514_v32 = vpop.permute.xlu2 %513 }
 0x43a   : > { %500 = vrot.lane.b32.xlu1 %v1542_v60, %s1308_s6 }
 0x440   : > { %v707_v28 = vpop.permute.xlu0 %706 }
 0x441   : > { %v709_v29 = vsel %vm708_vm6, %v705_v26, %v707_v28 }
 0x442   : > { %431 = vrot.lane.b32.xlu1 %v1514_v49, %s1298_s29  ;;  %v753_v31 = vsel %vm586_vm12, %v709_v29, %v1579_v33 }
 0x448   : > { %v721_v27 = vpop.permute.xlu1 %720  ;;  %v584_v36 = vpop.permute.xlu0 %583 }
 0x449   : > { %v585_v3 = vsel %vm492_vm9, %v1608_v55, %v584_v36 }
 0x44a   : > { %453 = vrot.lane.b32.xlu1 %v1522_v52, %s1294_s5  ;;  %v617_v7 = vsel %vm592_vm1, %v1606_v46, %v585_v3 }
 0x450   : > { %v723_v30 = vpop.permute.xlu1 %722  ;;  %v528_v37 = vpop.permute.xlu0 %527 }
 0x451   : > { %v724_v60 = vsel %vm433_vm15, %v721_v27, %v723_v30  ;;  %v757_v35 = vsel %vm589_vm14, %v753_v31, %v723_v30 }
 0x452   : > { %774 = vrot.lane.b32.xlu0 %v757_v35, %s1308_s6  ;;  %v755_v49 = vsel %vm589_vm14, %v751_v34, %v724_v60 }
 0x453   : > { %772 = vrot.lane.b32.xlu2 %v755_v49, %s1308_s6 }
 0x458   : > { %v512_v52 = vpop.permute.xlu1 %511  ;;  %v541_v39 = vpop.permute.xlu0 %540 }
 0x459   : > { %v516_v54 = vsel %vm515_vm8, %v512_v52, %v514_v32 }
 0x45a   : > { %490 = vrot.lane.b32.xlu0 %v1539_v59, %s1297_s21  ;;  %v539_v59 = vpop.permute.xlu2 %538  ;;  %v605_v5 = vsel %vm586_vm12, %v516_v54, %v1552_v1 }
 0x45b   : > { %502 = vrot.lane.b32.xlu2 %v1544_v61, %s1308_s6  ;;  %v542_v9 = vsel %vm445_vm0, %v539_v59, %v541_v39 }
 0x460   : > { %v530_v33 = vpop.permute.xlu1 %529  ;;  %v477_v41 = vpop.permute.xlu0 %476 }
 0x461   : > { %v531_v6 = vsel %vm433_vm15, %v528_v37, %v530_v33 }
 0x462   : > { %429 = vrot.lane.b32.xlu0 %v1512_v48, %s1298_s29  ;;  %v467_v61 = vpop.permute.xlu2 %466  ;;  %v607_v55 = vsel %vm589_vm14, %v605_v5, %v531_v6  ;;  %s1785_s29 = sld [smem:[#allocation22_spill]] }
 0x463   : > { %441 = vrot.lane.b32.xlu2 %v1517_v50, %s1307_s26  ;;  %v609_v13 = vsel %vm592_vm1, %v607_v55, %v542_v9 }
 0x468   : > { %v465_v38 = vpop.permute.xlu1 %464  ;;  %s1180_s16 = scalar_lea.hbm %s1785_s29, 64 }
 0x469   : > { %v469_v8 = vsel %vm468_vm11, %v465_v38, %v467_v61 }
 0x46a   : > { %443 = vrot.lane.b32.xlu0 %v1519_v51, %s1307_s26  ;;  %v489_v48 = vpop.permute.xlu2 %488 }
 0x46b   : > { %455 = vrot.lane.b32.xlu2 %v1524_v53, %s1294_s5  ;;  %s814_s5 = sadd.s32 %s1270_s24, %s947_s17 }
 0x46c   : > { %s948_s8 = sshll.u32 %s814_s5, 3 }
 0x46d   : > { %s816_s30 = scalar_lea.hbm %s1785_s29, %s948_s8 }
 0x46e   : > { %s820_s12 = sshll.u32 %s816_s30, 4  ;;  %s821_s12 = int_to_ptr.hbm [resolvable:$true] %s820_s12 }
 0x46f   : > { %s1174_s14 = sshra.s32 %s821_s12, 4  ;;  %s1175_s14 = int_to_ptr.hbm [resolvable:$true] %s1174_s14 }
 0x470   : > { %v479_v40 = vpop.permute.xlu1 %478  ;;  %s1176_s15 = scalar_lea.hbm %s1175_s14, 8  ;;  %p1181_p2 = scmp.lt.s32.totalorder %s1175_s14, %s1785_s29 }
 0x471   : > { %v481_v10 = vsel %vm480_vm13, %v477_v41, %v479_v40  ;;  %p1177_p4 = scmp.ne.s32.totalorder %s1175_s14, %s1176_s15  ;;  %p1182_p3 = scmp.lt.s32.totalorder %s1180_s16, %s1176_s15 }
 0x472   : > { %v598_v1 = vsel %vm586_vm12, %v469_v8, %v481_v10 }
 0x473   : > { %p1178_p11 = pnand %p1177_p4, %p1409_p6  ;;  %p1183_p5 = por %p1182_p3, %p1181_p2 }
 0x475   : > { %p1179_p0 = pneg %p1178_p11 }
 0x477   : > { %p1184_p7 = pnand %p1183_p5, %p1179_p0 }
 0x484   : > { %v765_v43 = vpop.permute.xlu0 %764 }
 0x485   : > { %v767_v42 = vpop.permute.xlu1 %766 }
 0x486   : > { %v776_v2 = vsel %vm504_vm7, %v765_v43, %v767_v42 }
 0x48d   : > { %v771_v50 = vpop.permute.xlu2 %770 }
 0x4a4   : > { %v769_v44 = vpop.permute.xlu1 %768 }
 0x4a5   : > { %v777_v0 = vsel %vm504_vm7, %v769_v44, %v771_v50 }
 0x4ac   : > { %v501_v58 = vpop.permute.xlu1 %500 }
 0x4ad   : > { %v773_v51 = vpop.permute.xlu2 %772 }
 0x4b4   : > { %v432_v4 = vpop.permute.xlu1 %431 }
 0x4b5   : > { %v503_v62 = vpop.permute.xlu2 %502 }
 0x4b6   : > { %v505_v14 = vsel %vm504_vm7, %v501_v58, %v503_v62 }
 0x4bc   : > { %v454_v16 = vpop.permute.xlu1 %453 }
 0x4bd   : > { %v442_v57 = vpop.permute.xlu2 %441 }
 0x4c4   : > { %v775_v45 = vpop.permute.xlu0 %774 }
 0x4c5   : > { %v778_v53 = vsel %vm504_vm7, %v773_v51, %v775_v45  ;;  %v456_v15 = vpop.permute.xlu2 %455 }
 0x4c6   : > { %v787_v63 = vsel %vm592_vm1, %v778_v53, 0  ;;  %v458_v20 = vsel %vm457_vm10, %v454_v16, %v456_v15 }
 0x4c7   : > { %790 = vmatpush.bf16.msra.mxu0 %v787_v63 }
 0x4cb   : > { %791 = vmatpush.bf16.msra.mxu0 %v777_v0 }
 0x4cc   : > { %v491_v56 = vpop.permute.xlu0 %490 }
 0x4cd   : > { %v493_v11 = vsel %vm492_vm9, %v489_v48, %v491_v56 }
 0x4ce   : > { %v600_v46 = vsel %vm589_vm14, %v598_v1, %v493_v11 }
 0x4cf   : > { %792 = vmatpush.bf16.msra.mxu0 %v776_v2  ;;  %v602_v18 = vsel %vm592_vm1, %v600_v46, %v505_v14 }
 0x4d3   : > { %793 = vmatpush.bf16.msra.mxu0 %v617_v7 }
 0x4d4   : > { %v430_v12 = vpop.permute.xlu0 %429 }
 0x4d5   : > { %v434_v17 = vsel %vm433_vm15, %v430_v12, %v432_v4 }
 0x4d6   : > { %v588_v21 = vsel %vm586_vm12, %v1509_v47, %v434_v17 }
 0x4d7   : > { %794 = vmatpush.bf16.msra.mxu0 %v609_v13 }
 0x4db   : > { %795 = vmatpush.bf16.msra.mxu0 %v602_v18 }
 0x4dc   : > { %v444_v19 = vpop.permute.xlu0 %443 }
 0x4dd   : > { %v446_v22 = vsel %vm445_vm0, %v442_v57, %v444_v19 }
 0x4de   : > { %v591_v23 = vsel %vm589_vm14, %v588_v21, %v446_v22 }
 0x4df   : > { %v594_v24 = vsel %vm592_vm1, %v591_v23, %v458_v20 }
 0x4e0   : > { %796 = vmatpush.bf16.msra.mxu0 %v594_v24 }
 0x4e3   : > { %945 = vmatmul.msk.bf16.vlgmr.msra.gmra.mxu0 %vm492_vm9, %v781_v25 }
 0x560   : > { %v798_v47 = vpop.f32.mrf.mxu0 }
 0x561   : > { %802 = vst [vmem:[%s275_s27] sm:$0xff] %v798_v47 }
 0x562   : > { %1187 = shalt.err (!%p1184_p7)
}
 0x563   : > { %969 = dma.vmem_to_hbm [thread:$0]  (%p1409_p6), %s819_s11, 128, %s821_s12, %s804_s13  }
 0x568   : > { %v800_v26 = vpop.f32.mrf.mxu0 }
 0x569 PF: > { %s1786_s0 = sld [smem:[#allocation12_spill]]  ;;  %p986_p8 = scmp.ge.s32.totalorder %s1286_s28, 2 }
 0x56b   : > { %p980_p9 = pnand %p986_p8, %p1415_p10 }
 0x56d   : > { %p981_p12 = pneg %p980_p9 }
 0x56f   : > { %s832_s27 = sand.u32 1, %s1786_s0  }
 0x570   : > { %s833_s6 = scalar_lea.sflag [#allocation5], %s832_s27 }
 0x571   : > { %1241 = dma.done.wait (%p981_p12), %s833_s6, 128  }
 0x572   : > { %1243 = vsyncadd (%p981_p12), %s833_s6, 4294967168  ;;  %s22_s28 = sadd.s32 1, %s1286_s28   ;;  %s1788_s10 = smov %s1460_s18 }
 0x573   : > { %p19_p13 = scmp.ge.s32.totalorder %s22_s28, 10   ;;  %s1789_s24 = sld [smem:[#allocation13_spill]] }
 0x574   : > { %s1790_s25 = sld [smem:[#allocation14_spill]]  ;;  %s1793_s18 = smov %s1250_s19 }
 0x575   : > { %s1791_s26 = sld [smem:[#allocation17_spill]]  ;;  %s1794_s19 = smov %s1254_s20 }
 0x576   : > { %s1792_s27 = sld [smem:[#allocation18_spill]]  ;;  %s1795_s20 = smov %s1788_s10 }
 0x577   : > { %s1796_s21 = smov %s1262_s22  ;;  %s1797_s22 = smov %s1266_s23 }
 0x578   : > { %s1798_s23 = smov %s1457_s9  ;;  %21 = sbr.rel (!%p19_p13) target bundleno = 15 (0xf), region = 121 }
 0x57d   :  { %839 = vsyncpa [#allocation4], 1 }
 0x57e   :  { %841 = vsyncpa [#allocation4 + $0x1], 1 }
 0x57f   :  { %842 = vsyncpa [#allocation7], 1 }
 0x580   :  { %844 = vsyncpa [#allocation7 + $0x1], 1 }
 0x581   :  { %845 = vsyncpa [#allocation5], 1 }
 0x582   :  { %847 = vsyncpa [#allocation5 + $0x1], 1 }

</bundles_post_ra>
